<compile_context>
chip_gen: v6e
topology: v6e:2x2x1
jax: 0.10.0
libtpu: 0.0.40
codegen_flags: <defaults>
</compile_context>

<pallas_src>
import jax
import jax.numpy as jnp
from jax.experimental import pallas as pl
from jax.experimental.pallas import tpu as pltpu

INPUT_DIM = 14
NUM_CLASSES = 3
HIDDEN1 = 128
HIDDEN2 = 64
HEAD_OUT = 8        # fused heads: 3 logits + 3 log_vars + 2 pad lanes (contiguous 32 B/row store)
_TB_CAP = 8192      # max batch-tile rows (VMEM per step stays < 1 MB double-buffered)


def _mlp_kernel(x_ref, w1_ref, b1_ref, w2_ref, b2_ref, w34_ref, b34_ref, out_ref):
    # Whole hot path (3 matmuls + bias + relu) in one kernel.  Matmul operands are
    # bf16 (single-pass MXU), accumulation and bias adds are f32.
    x = x_ref[...]                                                        # (tb, 14) bf16
    h1 = jnp.dot(x, w1_ref[...], preferred_element_type=jnp.float32)      # (tb, 128) f32
    h1 = jnp.maximum(h1 + b1_ref[...], 0.0).astype(jnp.bfloat16)
    h2 = jnp.dot(h1, w2_ref[...], preferred_element_type=jnp.float32)     # (tb, 64) f32
    h2 = jnp.maximum(h2 + b2_ref[...], 0.0).astype(jnp.bfloat16)
    out = jnp.dot(h2, w34_ref[...], preferred_element_type=jnp.float32)   # (tb, 8) f32
    out_ref[...] = (out + b34_ref[...]).astype(out_ref.dtype)


def _cdiv(a, b):
    return -(-a // b)


def _round_up(n, m):
    return _cdiv(n, m) * m


def _choose_tiling(B):
    """Return (tb, B_pad).  MXU only needs sublane (8) alignment on M; for large B
    use big tiles (amortize per-step overhead) and an even step count (v7x megacore)."""
    B8 = _round_up(B, 8)
    if B8 <= 512:
        return B8, B8                      # single grid step, minimal padding
    n_steps = max(_cdiv(B8, _TB_CAP), 2)
    n_steps = _round_up(n_steps, 2)        # even, >= 2: balanced across 2 TensorCores
    tb = _round_up(_cdiv(B8, n_steps), 8)
    return tb, n_steps * tb


def prepare_params(params):
    """One-time parameter prep (call once, reuse across forwards):
    cast matmul weights to bf16, keep biases f32, and fuse the two 3-wide heads into
    a single zero-padded (HIDDEN2, HEAD_OUT) weight + (1, HEAD_OUT) bias."""
    w1, b1, w2, b2, w3, b3, w4, b4 = params
    w34 = jnp.zeros((HIDDEN2, HEAD_OUT), jnp.float32)
    w34 = w34.at[:, :NUM_CLASSES].set(w3)
    w34 = w34.at[:, NUM_CLASSES:2 * NUM_CLASSES].set(w4)
    b34 = jnp.zeros((1, HEAD_OUT), jnp.float32)
    b34 = b34.at[:, :NUM_CLASSES].set(b3)
    b34 = b34.at[:, NUM_CLASSES:2 * NUM_CLASSES].set(b4)
    return (w1.astype(jnp.bfloat16), b1.astype(jnp.float32),
            w2.astype(jnp.bfloat16), b2.astype(jnp.float32),
            w34.astype(jnp.bfloat16), b34.astype(jnp.float32))


def multiclass_classifier_forward(x, prepared, *, tb=None):
    """x: (B, INPUT_DIM) float32.  prepared: output of prepare_params().
    Returns (logits, log_vars), each (B, NUM_CLASSES) float32."""
    B, D = x.shape
    assert D == INPUT_DIM
    w1, b1, w2, b2, w34, b34 = prepared

    if tb is None:
        tb, B_pad = _choose_tiling(B)
    else:
        tb = _round_up(tb, 8)
        B_pad = _round_up(B, tb)

    x = x.astype(jnp.bfloat16)             # halves input DMA bytes, single-pass MXU
    if B_pad != B:
        x = jnp.pad(x, ((0, B_pad - B), (0, 0)))

    def rep(shape):
        # full (un-tiled) parameter block, same block every grid step -> VMEM resident
        return pl.BlockSpec(shape, lambda i: (0,) * len(shape))

    grid_spec = pltpu.PrefetchScalarGridSpec(
        num_scalar_prefetch=0,
        grid=(B_pad // tb,),
        in_specs=[
            pl.BlockSpec((tb, INPUT_DIM), lambda i: (i, 0)),   # x, tiled over batch
            rep((INPUT_DIM, HIDDEN1)), rep((1, HIDDEN1)),
            rep((HIDDEN1, HIDDEN2)),   rep((1, HIDDEN2)),
            rep((HIDDEN2, HEAD_OUT)),  rep((1, HEAD_OUT)),
        ],
        out_specs=pl.BlockSpec((tb, HEAD_OUT), lambda i: (i, 0)),
    )

    fused = pl.pallas_call(
        _mlp_kernel,
        out_shape=jax.ShapeDtypeStruct((B_pad, HEAD_OUT), jnp.float32),
        grid_spec=grid_spec,
        compiler_params=pltpu.CompilerParams(
            dimension_semantics=("parallel",)),
    )(x, w1, b1, w2, b2, w34, b34)

    logits = fused[:B, :NUM_CLASSES]
    log_vars = fused[:B, NUM_CLASSES:2 * NUM_CLASSES]
    return logits, log_vars


def init_params(key):
    """Deterministic init mimicking nn.Linear default (uniform ±1/sqrt(fan_in))."""
    def linear(key, fan_in, fan_out):
        kw, kb = jax.random.split(key)
        bound = 1.0 / (fan_in ** 0.5)
        w = jax.random.uniform(kw, (fan_in, fan_out), jnp.float32, -bound, bound)
        b = jax.random.uniform(kb, (1, fan_out), jnp.float32, -bound, bound)
        return w, b

    k1, k2, k3, k4 = jax.random.split(key, 4)
    w1, b1 = linear(k1, INPUT_DIM, HIDDEN1)
    w2, b2 = linear(k2, HIDDEN1, HIDDEN2)
    w3, b3 = linear(k3, HIDDEN2, NUM_CLASSES)
    w4, b4 = linear(k4, HIDDEN2, NUM_CLASSES)
    return (w1, b1, w2, b2, w3, b3, w4, b4)


def reference_forward(x, params):
    """Pure f32 reference (matches the PyTorch module's math)."""
    w1, b1, w2, b2, w3, b3, w4, b4 = params
    h1 = jnp.maximum(x @ w1 + b1, 0.0)
    h2 = jnp.maximum(h1 @ w2 + b2, 0.0)
    return h2 @ w3 + b3, h2 @ w4 + b4


if __name__ == "__main__":
    key = jax.random.PRNGKey(0)
    k_params, k_x = jax.random.split(key)
    params = init_params(k_params)
    prepared = prepare_params(params)   # fused head + bf16 cast, done once

    # Small batch: single grid step, tb = round_up(B, 8) (no 256-row padding waste).
    B = 16
    x = jax.random.normal(k_x, (B, INPUT_DIM), jnp.float32)
    logits, log_vars = multiclass_classifier_forward(x, prepared)
    jax.block_until_ready((logits, log_vars))

    ref_logits, ref_log_vars = reference_forward(x, params)
    assert logits.shape == (B, NUM_CLASSES) and log_vars.shape == (B, NUM_CLASSES)
    # bf16 MXU operands vs f32 reference -> loosened tolerance (trade-off per review).
    assert jnp.allclose(logits, ref_logits, atol=5e-2, rtol=5e-2)
    assert jnp.allclose(log_vars, ref_log_vars, atol=5e-2, rtol=5e-2)

    # Larger, non-tile-multiple batch: exercises the even multi-step grid + padding path.
    B2 = 1000
    x2 = jax.random.normal(jax.random.PRNGKey(7), (B2, INPUT_DIM), jnp.float32)
    lg2, lv2 = multiclass_classifier_forward(x2, prepared)
    jax.block_until_ready((lg2, lv2))
    r_lg2, r_lv2 = reference_forward(x2, params)
    assert lg2.shape == (B2, NUM_CLASSES) and lv2.shape == (B2, NUM_CLASSES)
    assert jnp.allclose(lg2, r_lg2, atol=5e-2, rtol=5e-2)
    assert jnp.allclose(lv2, r_lv2, atol=5e-2, rtol=5e-2)

    print("KERNEL_OK")
</pallas_src>

<mosaic_0001>
module attributes {stable_mosaic.version = 11 : i64} {
  func.func @_mlp_kernel(%arg0: i32, %arg1: memref<16x14xbf16, #tpu.memory_space<vmem>>, %arg2: memref<14x128xbf16, #tpu.memory_space<vmem>>, %arg3: memref<1x128xf32, #tpu.memory_space<vmem>>, %arg4: memref<128x64xbf16, #tpu.memory_space<vmem>>, %arg5: memref<1x64xf32, #tpu.memory_space<vmem>>, %arg6: memref<64x8xbf16, #tpu.memory_space<vmem>>, %arg7: memref<1x8xf32, #tpu.memory_space<vmem>>, %arg8: memref<16x8xf32, #tpu.memory_space<vmem>>) attributes {dimension_semantics = [#tpu.dimension_semantics<parallel>], iteration_bounds = array<i64: 1>, scalar_prefetch = 0 : i64, scratch_operands = 0 : i64, tpu.core_type = #tpu.core_type<tc>, window_params = [{transform_indices = @transform_0, window_bounds = array<i64: 16, 14>}, {pipeline_mode = #tpu.pipeline_mode<synchronous>, transform_indices = @transform_1, window_bounds = array<i64: 14, 128>}, {pipeline_mode = #tpu.pipeline_mode<synchronous>, transform_indices = @transform_2, window_bounds = array<i64: 1, 128>}, {pipeline_mode = #tpu.pipeline_mode<synchronous>, transform_indices = @transform_3, window_bounds = array<i64: 128, 64>}, {pipeline_mode = #tpu.pipeline_mode<synchronous>, transform_indices = @transform_4, window_bounds = array<i64: 1, 64>}, {pipeline_mode = #tpu.pipeline_mode<synchronous>, transform_indices = @transform_5, window_bounds = array<i64: 64, 8>}, {pipeline_mode = #tpu.pipeline_mode<synchronous>, transform_indices = @transform_6, window_bounds = array<i64: 1, 8>}, {transform_indices = @transform_7, window_bounds = array<i64: 16, 8>}]} {
    %c0 = arith.constant 0 : index
    %c0_0 = arith.constant 0 : index
    %0 = vector.load %arg1[%c0, %c0_0] : memref<16x14xbf16, #tpu.memory_space<vmem>>, vector<16x14xbf16>
    %c0_1 = arith.constant 0 : index
    %c0_2 = arith.constant 0 : index
    %1 = vector.load %arg2[%c0_1, %c0_2] : memref<14x128xbf16, #tpu.memory_space<vmem>>, vector<14x128xbf16>
    %cst = arith.constant dense<0.000000e+00> : vector<16x128xf32>
    %2 = tpu.matmul %0, %1, %cst {dimension_numbers = #tpu.dot_dimension_numbers<[1], [0], [0], [1], [0, 0, 1, 1], [], []>} : vector<16x14xbf16>, vector<14x128xbf16>, vector<16x128xf32> -> vector<16x128xf32>
    %c0_3 = arith.constant 0 : index
    %c0_4 = arith.constant 0 : index
    %3 = vector.load %arg3[%c0_3, %c0_4] : memref<1x128xf32, #tpu.memory_space<vmem>>, vector<1x128xf32>
    %4 = vector.broadcast %3 : vector<1x128xf32> to vector<16x128xf32>
    %5 = arith.addf %2, %4 : vector<16x128xf32>
    %cst_5 = arith.constant 0.000000e+00 : f32
    %6 = vector.broadcast %cst_5 : f32 to vector<16x128xf32>
    %7 = arith.maximumf %5, %6 : vector<16x128xf32>
    %8 = arith.truncf %7 : vector<16x128xf32> to vector<16x128xbf16>
    %c0_6 = arith.constant 0 : index
    %c0_7 = arith.constant 0 : index
    %9 = vector.load %arg4[%c0_6, %c0_7] : memref<128x64xbf16, #tpu.memory_space<vmem>>, vector<128x64xbf16>
    %cst_8 = arith.constant dense<0.000000e+00> : vector<16x64xf32>
    %10 = tpu.matmul %8, %9, %cst_8 {dimension_numbers = #tpu.dot_dimension_numbers<[1], [0], [0], [1], [0, 0, 1, 1], [], []>} : vector<16x128xbf16>, vector<128x64xbf16>, vector<16x64xf32> -> vector<16x64xf32>
    %c0_9 = arith.constant 0 : index
    %c0_10 = arith.constant 0 : index
    %11 = vector.load %arg5[%c0_9, %c0_10] : memref<1x64xf32, #tpu.memory_space<vmem>>, vector<1x64xf32>
    %12 = vector.broadcast %11 : vector<1x64xf32> to vector<16x64xf32>
    %13 = arith.addf %10, %12 : vector<16x64xf32>
    %cst_11 = arith.constant 0.000000e+00 : f32
    %14 = vector.broadcast %cst_11 : f32 to vector<16x64xf32>
    %15 = arith.maximumf %13, %14 : vector<16x64xf32>
    %16 = arith.truncf %15 : vector<16x64xf32> to vector<16x64xbf16>
    %c0_12 = arith.constant 0 : index
    %c0_13 = arith.constant 0 : index
    %17 = vector.load %arg6[%c0_12, %c0_13] : memref<64x8xbf16, #tpu.memory_space<vmem>>, vector<64x8xbf16>
    %cst_14 = arith.constant dense<0.000000e+00> : vector<16x8xf32>
    %18 = tpu.matmul %16, %17, %cst_14 {dimension_numbers = #tpu.dot_dimension_numbers<[1], [0], [0], [1], [0, 0, 1, 1], [], []>} : vector<16x64xbf16>, vector<64x8xbf16>, vector<16x8xf32> -> vector<16x8xf32>
    %c0_15 = arith.constant 0 : index
    %c0_16 = arith.constant 0 : index
    %19 = vector.load %arg7[%c0_15, %c0_16] : memref<1x8xf32, #tpu.memory_space<vmem>>, vector<1x8xf32>
    %20 = vector.broadcast %19 : vector<1x8xf32> to vector<16x8xf32>
    %21 = arith.addf %18, %20 : vector<16x8xf32>
    %c0_17 = arith.constant 0 : index
    %c0_18 = arith.constant 0 : index
    %22 = vector.load %arg8[%c0_17, %c0_18] : memref<16x8xf32, #tpu.memory_space<vmem>>, vector<16x8xf32>
    tpu.vector_store %arg8[%c0_17, %c0_18], %21 {strides = array<i32>} : memref<16x8xf32, #tpu.memory_space<vmem>>, vector<16x8xf32>,
    return
  }
  func.func @transform_0(%arg0: i32) -> (i32, i32) {
    %c0_i32 = arith.constant 0 : i32
    %c0_i32_0 = arith.constant 0 : i32
    return %arg0, %c0_i32 : i32, i32
  }
  func.func @transform_1(%arg0: i32) -> (i32, i32) {
    %c0_i32 = arith.constant 0 : i32
    %c0_i32_0 = arith.constant 0 : i32
    %c0_i32_1 = arith.constant 0 : i32
    return %c0_i32, %c0_i32_0 : i32, i32
  }
  func.func @transform_2(%arg0: i32) -> (i32, i32) {
    %c0_i32 = arith.constant 0 : i32
    %c0_i32_0 = arith.constant 0 : i32
    %c0_i32_1 = arith.constant 0 : i32
    return %c0_i32, %c0_i32_0 : i32, i32
  }
  func.func @transform_3(%arg0: i32) -> (i32, i32) {
    %c0_i32 = arith.constant 0 : i32
    %c0_i32_0 = arith.constant 0 : i32
    %c0_i32_1 = arith.constant 0 : i32
    return %c0_i32, %c0_i32_0 : i32, i32
  }
  func.func @transform_4(%arg0: i32) -> (i32, i32) {
    %c0_i32 = arith.constant 0 : i32
    %c0_i32_0 = arith.constant 0 : i32
    %c0_i32_1 = arith.constant 0 : i32
    return %c0_i32, %c0_i32_0 : i32, i32
  }
  func.func @transform_5(%arg0: i32) -> (i32, i32) {
    %c0_i32 = arith.constant 0 : i32
    %c0_i32_0 = arith.constant 0 : i32
    %c0_i32_1 = arith.constant 0 : i32
    return %c0_i32, %c0_i32_0 : i32, i32
  }
  func.func @transform_6(%arg0: i32) -> (i32, i32) {
    %c0_i32 = arith.constant 0 : i32
    %c0_i32_0 = arith.constant 0 : i32
    %c0_i32_1 = arith.constant 0 : i32
    return %c0_i32, %c0_i32_0 : i32, i32
  }
  func.func @transform_7(%arg0: i32) -> (i32, i32) {
    %c0_i32 = arith.constant 0 : i32
    %c0_i32_0 = arith.constant 0 : i32
    return %arg0, %c0_i32 : i32, i32
  }
}

</mosaic_0001>

<bundles_post_ra>
// kernel: tpu_custom_call.1
= control target key start
LH: loop header
LB: loop body
LE: loop exit
PB: predicated region body
PF: predicated region fallthrough
CT: control target
= control target key end

     0   :  { %vm52_vm0 = vcmask 1046528   ;;  %v395_v0 = vmov 0.0   ;;  %vm396_vm1 = vmmov 0   ;;  %vm48_vm2 = vcmask 113664   ;;  %s494_s1 = inlined_call_operand.vmem [shape: bf16[14,128], index: 1, kind: input, shape index: {}]   ;;  %s495_s0 = inlined_call_operand.vmem [shape: bf16[16,14], index: 0, kind: input, shape index: {}]   ;;  %s496_s3 = inlined_call_operand.vmem [shape: bf16[128,64], index: 3, kind: input, shape index: {}]   ;;  %s497_s5 = inlined_call_operand.vmem [shape: bf16[64,8], index: 5, kind: input, shape index: {}]   ;;  %s498_s2 = inlined_call_operand.vmem [shape: f32[1,128], index: 2, kind: input, shape index: {}]   ;;  %s499_s4 = inlined_call_operand.vmem [shape: f32[1,64], index: 4, kind: input, shape index: {}]   ;;  %s500_s6 = inlined_call_operand.vmem [shape: f32[1,8], index: 6, kind: input, shape index: {}]   ;;  %s501_s7 = inlined_call_operand.vmem [shape: f32[16,8], index: 7, kind: output, shape index: {}]  }
   0x1   :  { %341 = vmatprep.subr.bf16.mxu0 %v395_v0  ;;  %v381_v1 = vld [vmem:[%s494_s1] sm:$0x7f]   ;;  %343 = vmatprep.mubr.msk.bf16.mxu0 %vm396_vm1, %v395_v0  ;;  %v383_v4 = vld [vmem:[%s496_s3 + $0x38] sm:$0xff]   ;;  %v384_v5 = vld [vmem:[%s496_s3 + $0x30] sm:$0xff]   ;;  %vm254_vm3 = vcmask 523264   ;;  %vm299_vm4 = vcmask 64512  }
   0x2   :  { %v382_v2 = vld [vmem:[%s495_s0] sm:$0xff]   ;;  %347 = vmatprep.subr.bf16.mxu1 %v395_v0  ;;  %363 = vmatprep.mubr.msk.bf16.mxu1 %vm396_vm1, %v395_v0  ;;  %v54_v3 = vsel %vm52_vm0, %v381_v1, 0  ;;  %v385_v6 = vld [vmem:[%s496_s3 + $0x28] sm:$0xff]   ;;  %v387_v8 = vld [vmem:[%s496_s3 + $0x18] sm:$0xff]  }
   0x3   :  { %342 = vmatpush3.bf16.msra.mxu0 %v54_v3  ;;  %348 = vmatpush3.bf16.msra.mxu1 %v383_v4  ;;  %v386_v7 = vld [vmem:[%s496_s3 + $0x20] sm:$0xff]   ;;  %v388_v9 = vld [vmem:[%s496_s3 + $0x10] sm:$0xff]   ;;  %v389_v10 = vld [vmem:[%s496_s3 + $0x8] sm:$0xff]  }
   0x4   :  { %367 = vmatprep.subr.bf16.mxu0 %v395_v0  ;;  %349 = vmatprep.subr.bf16.mxu1 %v395_v0  ;;  %v390_v11 = vld [vmem:[%s496_s3] sm:$0xff]   ;;  %v391_v12 = vld [vmem:[%s497_s5 + $0x18] sm:$0xff]   ;;  %v392_v23 = vld [vmem:[%s497_s5 + $0x10] sm:$0xff]  }
   0x5   :  { %v306_v13 = vld [vmem:[%s498_s2] ss:$0 sm:$0xff]  ;;  %v393_v24 = vld [vmem:[%s497_s5 + $0x8] sm:$0xff]  }
   0x6   :  { %344 = vmatmul.mubr.msk.bf16.vlgmr.msra.gmra.mxu0 %vm48_vm2, %v382_v2  ;;  %v394_v25 = vld [vmem:[%s497_s5] sm:$0xff]  }
   0x7   :  { %375 = vmatprep.mubr.msk.bf16.mxu0 %vm396_vm1, %v395_v0  ;;  %350 = vmatpush3.bf16.msra.mxu1 %v384_v5  ;;  %v310_v26 = vld [vmem:[%s499_s4] ss:$0 sm:$0xff] }
   0x8   :  { %351 = vmatprep.subr.bf16.mxu1 %v395_v0  ;;  %368 = vmatpush3.bf16.msra.mxu0 %v391_v12  ;;  %v319_v36 = vld [vmem:[%s500_s6] ss:$0 sm:$0xff] }
   0x9   :  { %369 = vmatprep.subr.bf16.mxu0 %v395_v0 }
   0xb   :  { %352 = vmatpush3.bf16.msra.mxu1 %v385_v6 }
   0xc   :  { %353 = vmatprep.subr.bf16.mxu1 %v395_v0  ;;  %370 = vmatpush3.bf16.msra.mxu0 %v392_v23 }
   0xd   :  { %371 = vmatprep.subr.bf16.mxu0 %v395_v0 }
   0xf   :  { %354 = vmatpush3.bf16.msra.mxu1 %v386_v7 }
  0x10   :  { %355 = vmatprep.subr.bf16.mxu1 %v395_v0  ;;  %372 = vmatpush3.bf16.msra.mxu0 %v393_v24 }
  0x11   :  { %373 = vmatprep.subr.bf16.mxu0 %v395_v0 }
  0x13   :  { %356 = vmatpush3.bf16.msra.mxu1 %v387_v8 }
  0x14   :  { %357 = vmatprep.subr.bf16.mxu1 %v395_v0  ;;  %374 = vmatpush3.bf16.msra.mxu0 %v394_v25 }
  0x17   :  { %358 = vmatpush3.bf16.msra.mxu1 %v388_v9 }
  0x18   :  { %359 = vmatprep.subr.bf16.mxu1 %v395_v0 }
  0x1b   :  { %360 = vmatpush3.bf16.msra.mxu1 %v389_v10 }
  0x1c   :  { %361 = vmatprep.subr.bf16.mxu1 %v395_v0 }
  0x1f   :  { %362 = vmatpush3.bf16.msra.mxu1 %v390_v11 }
  0xc6   :  { %v90_v14 = vpop.f32.mrf.mxu0 }
  0xc7   :  { %v91_v16 = vadd.f32 %v306_v13, %v90_v14 }
  0xc8   :  { %v345_v15 = vpop.f32.mrf.mxu0 }
  0xc9   :  { %v97_v20 = vmax.f32 %v91_v16, 0.0 }
  0xca   :  { %v93_v17 = vpop.f32.mrf.mxu0 }
  0xcb   :  { %v94_v18 = vadd.f32 %v306_v13, %v93_v17 }
  0xcc   :  { %v346_v19 = vpop.f32.mrf.mxu0 }
  0xcd   :  { %v98_v21 = vmax.f32 %v94_v18, 0.0 }
  0xcf   :  { %v99_v22 = vpack.c.bf16 %v98_v21, %v97_v20 }
  0xd1   :  { %364 = vmatmul.mubr.bf16.vlgmr.msra.gmra.mxu1 %v99_v22 }
 0x191   :  { %v205_v27 = vpop.f32.mrf.mxu1 }
 0x192   :  { %v206_v29 = vadd.f32 %v310_v26, %v205_v27 }
 0x193   :  { %v365_v28 = vpop.f32.mrf.mxu1 }
 0x194   :  { %v212_v33 = vmax.f32 %v206_v29, 0.0 }
 0x195   :  { %v208_v30 = vpop.f32.mrf.mxu1 }
 0x196   :  { %v209_v31 = vadd.f32 %v310_v26, %v208_v30 }
 0x197   :  { %v366_v32 = vpop.f32.mrf.mxu1 }
 0x198   :  { %v213_v34 = vmax.f32 %v209_v31, 0.0 }
 0x19a   :  { %v214_v35 = vpack.c.bf16 %v213_v34, %v212_v33 }
 0x19c   :  { %376 = vmatmul.mubr.msk.bf16.vlgmr.msra.gmra.mxu0 %vm254_vm3, %v214_v35 }
 0x25c   :  { %v292_v37 = vpop.f32.mrf.mxu0 }
 0x25d   :  { %v293_v38 = vadd.f32 %v319_v36, %v292_v37 }
 0x25e   :  { %v377_v39 = vpop.f32.mrf.mxu0 }
 0x25f   :  { %300 = vst.msk [vmem:[%s501_s7] sm:$0xff] %vm299_vm4, %v293_v38 }
 0x260   :  { %v295_v40 = vpop.f32.mrf.mxu0 }
 0x261   :  { %v296_v41 = vadd.f32 %v319_v36, %v295_v40 }
 0x262   :  { %v378_v42 = vpop.f32.mrf.mxu0 }
 0x263   :  { %301 = vst.msk [vmem:[%s501_s7 + $0x8] sm:$0xff] %vm299_vm4, %v296_v41 }

</bundles_post_ra>
